<compile_context>
chip_gen: v7x
topology: tpu7x:2x2x1
jax: 0.10.0
libtpu: 0.0.40
codegen_flags: <defaults>
</compile_context>

<pallas_src>
import jax
import jax.numpy as jnp
from jax import lax
from jax.experimental import pallas as pl
from jax.experimental.pallas import tpu as pltpu

condition_dim = 4
hidden_dim = 48
input_dim = 3
latent_dim = 1
num_layers = 2          # -> exactly one hidden Linear in encoder and decoder
num_embeddings = 30
KSIZE = 3               # Conv1d kernel size

assert latent_dim == 1, "VQ block below is specialized for latent_dim == 1"
assert num_layers == 2

# ---------------------------------------------------------------------------
# Packed parameter slab: every weight/bias lives in one (SLAB_ROWS, 48) array.
# All block starts are multiples of 8 so every in-kernel read is sublane
# aligned.
# ---------------------------------------------------------------------------
_SLAB_LAYOUT = [
    ("conv_w",   KSIZE * input_dim),            # (9, H)  Conv1d weight, im2col order
    ("conv_b",   1),                            # (1, H)
    ("enc_h_w",  hidden_dim),                   # (H, H)
    ("enc_h_b",  1),                            # (1, H)
    ("dec_cn_w", condition_dim + input_dim),    # (C+Cin, H)  decoder input W for [c, noise]
    ("dec_z_w",  latent_dim),                   # (1, H)      decoder input W for z_q
    ("dec_in_b", 1),                            # (1, H)
    ("dec_h_w",  hidden_dim),                   # (H, H)
    ("dec_h_b",  1),                            # (1, H)
    ("dec_out_w", hidden_dim),                  # (H, Cin) in cols 0:Cin
    ("dec_out_b", 1),                           # (1, Cin) in cols 0:Cin
    ("lat_w",    hidden_dim),                   # (H, 1)   in col 0
    ("lat_b",    1),                            # (1, 1)   in col 0
    ("emb_col",  num_embeddings),               # (E, 1)   in col 0
    ("emb_row",  1),                            # (1, E)   in cols 0:E (transposed copy)
]


def _layout():
    offs, o = {}, 0
    for name, rows in _SLAB_LAYOUT:
        offs[name] = o
        o = ((o + rows + 7) // 8) * 8           # next start 8-aligned
    return offs, o


OFF, SLAB_ROWS = _layout()                      # SLAB_ROWS is a multiple of 8


def pack_params(p):
    """Pack the param dict into one (SLAB_ROWS, hidden_dim) f32 slab."""
    slab = jnp.zeros((SLAB_ROWS, hidden_dim), jnp.float32)
    conv_w9 = p["conv_w"].reshape(KSIZE * input_dim, hidden_dim)   # row k*Cin+i
    slab = slab.at[OFF["conv_w"]:OFF["conv_w"] + KSIZE * input_dim, :].set(conv_w9)
    slab = slab.at[OFF["conv_b"]:OFF["conv_b"] + 1, :].set(p["conv_b"])
    slab = slab.at[OFF["enc_h_w"]:OFF["enc_h_w"] + hidden_dim, :].set(p["enc_h_w"])
    slab = slab.at[OFF["enc_h_b"]:OFF["enc_h_b"] + 1, :].set(p["enc_h_b"])
    # decoder input layer: rows of dec_in_w are ordered [z | c | noise]
    slab = slab.at[OFF["dec_cn_w"]:OFF["dec_cn_w"] + condition_dim + input_dim, :].set(
        p["dec_in_w"][latent_dim:, :])
    slab = slab.at[OFF["dec_z_w"]:OFF["dec_z_w"] + latent_dim, :].set(
        p["dec_in_w"][:latent_dim, :])
    slab = slab.at[OFF["dec_in_b"]:OFF["dec_in_b"] + 1, :].set(p["dec_in_b"])
    slab = slab.at[OFF["dec_h_w"]:OFF["dec_h_w"] + hidden_dim, :].set(p["dec_h_w"])
    slab = slab.at[OFF["dec_h_b"]:OFF["dec_h_b"] + 1, :].set(p["dec_h_b"])
    slab = slab.at[OFF["dec_out_w"]:OFF["dec_out_w"] + hidden_dim, :input_dim].set(p["dec_out_w"])
    slab = slab.at[OFF["dec_out_b"]:OFF["dec_out_b"] + 1, :input_dim].set(p["dec_out_b"])
    slab = slab.at[OFF["lat_w"]:OFF["lat_w"] + hidden_dim, :latent_dim].set(p["lat_w"])
    slab = slab.at[OFF["lat_b"]:OFF["lat_b"] + 1, :latent_dim].set(p["lat_b"])
    slab = slab.at[OFF["emb_col"]:OFF["emb_col"] + num_embeddings, :latent_dim].set(p["emb"])
    slab = slab.at[OFF["emb_row"]:OFF["emb_row"] + 1, :num_embeddings].set(p["emb"].T)
    return slab


# ---------------------------------------------------------------------------
# Kernel
# ---------------------------------------------------------------------------
def cvqvae_kernel(x_col_ref, cn_ref, w_ref, out_ref):
    # x_col_ref: (Tout*B, K*Cin) im2col'd input, row = t*B + b
    # cn_ref:    (B, C+Cin)      pre-concatenated [c, noise]
    # w_ref:     (SLAB_ROWS, H)  packed parameter slab
    # out_ref:   (B, Cin)
    B = cn_ref.shape[0]
    Tout = x_col_ref.shape[0] // B

    def rows(name, n):
        off = OFF[name]                        # static, 8-aligned
        return w_ref[off:off + n, :]

    # ---------------- Encoder: Conv1d(k=3) as ONE matmul ----------------------
    w_conv = rows("conv_w", KSIZE * input_dim)                       # (9, H)
    conv = jnp.dot(x_col_ref[...], w_conv,
                   preferred_element_type=jnp.float32)               # (Tout*B, H)

    # temporal max-pool (no ReLU before the max, matching EncoderConv1).
    # Slices are sublane-aligned when B % 8 == 0; tree-reduce to shorten chain.
    parts = [conv[t * B:(t + 1) * B, :] for t in range(Tout)]
    while len(parts) > 1:
        nxt = [jnp.maximum(parts[i], parts[i + 1]) for i in range(0, len(parts) - 1, 2)]
        if len(parts) % 2:
            nxt.append(parts[-1])
        parts = nxt
    # conv bias is constant over time -> commutes with max; add once on (B, H).
    h = parts[0] + rows("conv_b", 1)                                 # (B, H)

    # encoder hidden Linear + ReLU  (num_layers - 1 == 1)
    h = jnp.maximum(
        jnp.dot(h, rows("enc_h_w", hidden_dim), preferred_element_type=jnp.float32)
        + rows("enc_h_b", 1), 0.0)
    z_e = (jnp.dot(h, rows("lat_w", hidden_dim)[:, :latent_dim],
                   preferred_element_type=jnp.float32)
           + rows("lat_b", 1)[:, :latent_dim])                       # (B, 1)

    # ---------------- Vector quantizer (latent_dim == 1 specialization) -------
    emb_row = rows("emb_row", 1)[:, :num_embeddings]                 # (1, E)
    diff = z_e - emb_row                                             # (B, E) pure VPU
    dist = diff * diff
    e_iota = lax.broadcasted_iota(jnp.int32, dist.shape, 1)
    min_d = jnp.min(dist, axis=-1, keepdims=True)
    # first index attaining the minimum (torch.argmin tie-break); compare on the
    # same tensor the min was taken from.
    idx = jnp.min(jnp.where(dist == min_d, e_iota, num_embeddings), axis=-1)
    onehot = (e_iota == idx[:, None]).astype(jnp.float32)            # (B, E)
    emb_col = rows("emb_col", num_embeddings)[:, :latent_dim]        # (E, 1)
    z_q = jnp.dot(onehot, emb_col, preferred_element_type=jnp.float32)  # (B, 1)
    # straight-through estimator: forward value equals z_q exactly.

    # ---------------- Decoder MLP (no lane-axis concat) -----------------------
    w_z = rows("dec_z_w", latent_dim)                                # (1, H)
    w_cn = rows("dec_cn_w", condition_dim + input_dim)               # (C+Cin, H)
    d = (z_q * w_z                                                   # (B,1)*(1,H) bcast
         + jnp.dot(cn_ref[...], w_cn, preferred_element_type=jnp.float32)
         + rows("dec_in_b", 1))
    d = jnp.maximum(d, 0.0)
    d = jnp.maximum(
        jnp.dot(d, rows("dec_h_w", hidden_dim), preferred_element_type=jnp.float32)
        + rows("dec_h_b", 1), 0.0)
    out = (jnp.dot(d, rows("dec_out_w", hidden_dim)[:, :input_dim],
                   preferred_element_type=jnp.float32)
           + rows("dec_out_b", 1)[:, :input_dim])
    out_ref[...] = out.astype(out_ref.dtype)


# ---------------------------------------------------------------------------
# Wrapper
# ---------------------------------------------------------------------------
def conditional_vqvae_forward(params, x, c, noise):
    B, T, Cin = x.shape
    assert Cin == input_dim and c.shape == (B, condition_dim)
    assert noise.shape == (B, input_dim)
    Tout = T - KSIZE + 1

    # im2col in the wrapper (layout plumbing): x_col[t*B + b, k*Cin + i] = x[b, t+k, i]
    patches = jnp.concatenate([x[:, k:k + Tout, :] for k in range(KSIZE)], axis=-1)  # (B,Tout,K*Cin)
    x_col = jnp.transpose(patches, (1, 0, 2)).reshape(Tout * B, KSIZE * Cin)
    # pre-concatenate the decoder's non-quantized inputs
    cn = jnp.concatenate([c, noise], axis=1)                                         # (B, C+Cin)
    slab = pack_params(params)                                                       # (SLAB_ROWS, H)

    # Everything is tiny (<< VMEM): gridless call, whole arrays as VMEM blocks.
    return pl.pallas_call(
        cvqvae_kernel,
        out_shape=jax.ShapeDtypeStruct((B, input_dim), jnp.float32),
        in_specs=[pl.BlockSpec(memory_space=pltpu.MemorySpace.VMEM),
                  pl.BlockSpec(memory_space=pltpu.MemorySpace.VMEM),
                  pl.BlockSpec(memory_space=pltpu.MemorySpace.VMEM)],
        out_specs=pl.BlockSpec(memory_space=pltpu.MemorySpace.VMEM),
    )(x_col, cn, slab)


def init_params(key):
    ks = jax.random.split(key, 16)
    dec_in = latent_dim + condition_dim + input_dim
    s = 0.1
    p = {
        "conv_w":   s * jax.random.normal(ks[0], (KSIZE, input_dim, hidden_dim), jnp.float32),
        "conv_b":   s * jax.random.normal(ks[1], (1, hidden_dim), jnp.float32),
        "enc_h_w":  s * jax.random.normal(ks[2], (hidden_dim, hidden_dim), jnp.float32),
        "enc_h_b":  s * jax.random.normal(ks[3], (1, hidden_dim), jnp.float32),
        "lat_w":    s * jax.random.normal(ks[4], (hidden_dim, latent_dim), jnp.float32),
        "lat_b":    s * jax.random.normal(ks[5], (1, latent_dim), jnp.float32),
        # VQ codebook: uniform(-1/E, 1/E) as in the module
        "emb":      jax.random.uniform(ks[6], (num_embeddings, latent_dim), jnp.float32,
                                       minval=-1.0 / num_embeddings,
                                       maxval=1.0 / num_embeddings),
        "dec_in_w": s * jax.random.normal(ks[7], (dec_in, hidden_dim), jnp.float32),
        "dec_in_b": s * jax.random.normal(ks[8], (1, hidden_dim), jnp.float32),
        "dec_h_w":  s * jax.random.normal(ks[9], (hidden_dim, hidden_dim), jnp.float32),
        "dec_h_b":  s * jax.random.normal(ks[10], (1, hidden_dim), jnp.float32),
        "dec_out_w": s * jax.random.normal(ks[11], (hidden_dim, input_dim), jnp.float32),
        "dec_out_b": s * jax.random.normal(ks[12], (1, input_dim), jnp.float32),
    }
    return p


if __name__ == "__main__":
    key = jax.random.PRNGKey(0)
    kp, kx, kc, kn = jax.random.split(key, 4)

    B, T = 8, 16
    params = init_params(kp)
    x = jax.random.normal(kx, (B, T, input_dim), jnp.float32)       # (B, seq, channels)
    c = jax.random.normal(kc, (B, condition_dim), jnp.float32)
    noise = jax.random.normal(kn, (B, input_dim), jnp.float32)

    out = conditional_vqvae_forward(params, x, c, noise)
    out = jax.block_until_ready(out)
    assert out.shape == (B, input_dim) and out.dtype == jnp.float32
    assert bool(jnp.all(jnp.isfinite(out)))
    print("KERNEL_OK")
</pallas_src>

<mosaic_0001>
module attributes {stable_mosaic.version = 11 : i64} {
  func.func @cvqvae_kernel(%arg0: memref<112x9xf32, #tpu.memory_space<vmem>>, %arg1: memref<8x7xf32, #tpu.memory_space<vmem>>, %arg2: memref<312x48xf32, #tpu.memory_space<vmem>>, %arg3: memref<8x3xf32, #tpu.memory_space<vmem>>) attributes {dimension_semantics = [], scalar_prefetch = 0 : i64, scratch_operands = 0 : i64, tpu.core_type = #tpu.core_type<tc>} {
    %c0 = arith.constant 0 : index
    %c0_0 = arith.constant 0 : index
    %0 = vector.load %arg2[%c0, %c0_0] : memref<312x48xf32, #tpu.memory_space<vmem>>, vector<9x48xf32>
    %c0_1 = arith.constant 0 : index
    %c0_2 = arith.constant 0 : index
    %1 = vector.load %arg0[%c0_1, %c0_2] : memref<112x9xf32, #tpu.memory_space<vmem>>, vector<112x9xf32>
    %cst = arith.constant dense<0.000000e+00> : vector<112x48xf32>
    %2 = tpu.matmul %1, %0, %cst {dimension_numbers = #tpu.dot_dimension_numbers<[1], [0], [0], [1], [0, 0, 1, 1], [], []>} : vector<112x9xf32>, vector<9x48xf32>, vector<112x48xf32> -> vector<112x48xf32>
    %3 = vector.extract_strided_slice %2 {offsets = [0, 0], sizes = [8, 48], strides = [1, 1]} : vector<112x48xf32> to vector<8x48xf32>
    %4 = vector.extract_strided_slice %2 {offsets = [8, 0], sizes = [8, 48], strides = [1, 1]} : vector<112x48xf32> to vector<8x48xf32>
    %5 = vector.extract_strided_slice %2 {offsets = [16, 0], sizes = [8, 48], strides = [1, 1]} : vector<112x48xf32> to vector<8x48xf32>
    %6 = vector.extract_strided_slice %2 {offsets = [24, 0], sizes = [8, 48], strides = [1, 1]} : vector<112x48xf32> to vector<8x48xf32>
    %7 = vector.extract_strided_slice %2 {offsets = [32, 0], sizes = [8, 48], strides = [1, 1]} : vector<112x48xf32> to vector<8x48xf32>
    %8 = vector.extract_strided_slice %2 {offsets = [40, 0], sizes = [8, 48], strides = [1, 1]} : vector<112x48xf32> to vector<8x48xf32>
    %9 = vector.extract_strided_slice %2 {offsets = [48, 0], sizes = [8, 48], strides = [1, 1]} : vector<112x48xf32> to vector<8x48xf32>
    %10 = vector.extract_strided_slice %2 {offsets = [56, 0], sizes = [8, 48], strides = [1, 1]} : vector<112x48xf32> to vector<8x48xf32>
    %11 = vector.extract_strided_slice %2 {offsets = [64, 0], sizes = [8, 48], strides = [1, 1]} : vector<112x48xf32> to vector<8x48xf32>
    %12 = vector.extract_strided_slice %2 {offsets = [72, 0], sizes = [8, 48], strides = [1, 1]} : vector<112x48xf32> to vector<8x48xf32>
    %13 = vector.extract_strided_slice %2 {offsets = [80, 0], sizes = [8, 48], strides = [1, 1]} : vector<112x48xf32> to vector<8x48xf32>
    %14 = vector.extract_strided_slice %2 {offsets = [88, 0], sizes = [8, 48], strides = [1, 1]} : vector<112x48xf32> to vector<8x48xf32>
    %15 = vector.extract_strided_slice %2 {offsets = [96, 0], sizes = [8, 48], strides = [1, 1]} : vector<112x48xf32> to vector<8x48xf32>
    %16 = vector.extract_strided_slice %2 {offsets = [104, 0], sizes = [8, 48], strides = [1, 1]} : vector<112x48xf32> to vector<8x48xf32>
    %17 = arith.maximumf %3, %4 : vector<8x48xf32>
    %18 = arith.maximumf %5, %6 : vector<8x48xf32>
    %19 = arith.maximumf %7, %8 : vector<8x48xf32>
    %20 = arith.maximumf %9, %10 : vector<8x48xf32>
    %21 = arith.maximumf %11, %12 : vector<8x48xf32>
    %22 = arith.maximumf %13, %14 : vector<8x48xf32>
    %23 = arith.maximumf %15, %16 : vector<8x48xf32>
    %24 = arith.maximumf %17, %18 : vector<8x48xf32>
    %25 = arith.maximumf %19, %20 : vector<8x48xf32>
    %26 = arith.maximumf %21, %22 : vector<8x48xf32>
    %27 = arith.maximumf %24, %25 : vector<8x48xf32>
    %28 = arith.maximumf %26, %23 : vector<8x48xf32>
    %29 = arith.maximumf %27, %28 : vector<8x48xf32>
    %c16 = arith.constant 16 : index
    %c0_3 = arith.constant 0 : index
    %30 = vector.load %arg2[%c16, %c0_3] : memref<312x48xf32, #tpu.memory_space<vmem>>, vector<1x48xf32>
    %31 = vector.broadcast %30 : vector<1x48xf32> to vector<8x48xf32>
    %32 = arith.addf %29, %31 : vector<8x48xf32>
    %c24 = arith.constant 24 : index
    %c0_4 = arith.constant 0 : index
    %33 = vector.load %arg2[%c24, %c0_4] : memref<312x48xf32, #tpu.memory_space<vmem>>, vector<48x48xf32>
    %cst_5 = arith.constant dense<0.000000e+00> : vector<8x48xf32>
    %34 = tpu.matmul %32, %33, %cst_5 {dimension_numbers = #tpu.dot_dimension_numbers<[1], [0], [0], [1], [0, 0, 1, 1], [], []>} : vector<8x48xf32>, vector<48x48xf32>, vector<8x48xf32> -> vector<8x48xf32>
    %c72 = arith.constant 72 : index
    %c0_6 = arith.constant 0 : index
    %35 = vector.load %arg2[%c72, %c0_6] : memref<312x48xf32, #tpu.memory_space<vmem>>, vector<1x48xf32>
    %36 = vector.broadcast %35 : vector<1x48xf32> to vector<8x48xf32>
    %37 = arith.addf %34, %36 : vector<8x48xf32>
    %cst_7 = arith.constant 0.000000e+00 : f32
    %38 = vector.broadcast %cst_7 : f32 to vector<8x48xf32>
    %39 = arith.maximumf %37, %38 : vector<8x48xf32>
    %c216 = arith.constant 216 : index
    %c0_8 = arith.constant 0 : index
    %40 = vector.load %arg2[%c216, %c0_8] : memref<312x48xf32, #tpu.memory_space<vmem>>, vector<48x48xf32>
    %41 = vector.extract_strided_slice %40 {offsets = [0, 0], sizes = [48, 1], strides = [1, 1]} : vector<48x48xf32> to vector<48x1xf32>
    %cst_9 = arith.constant dense<0.000000e+00> : vector<8x1xf32>
    %42 = tpu.matmul %39, %41, %cst_9 {dimension_numbers = #tpu.dot_dimension_numbers<[1], [0], [0], [1], [0, 0, 1, 1], [], []>} : vector<8x48xf32>, vector<48x1xf32>, vector<8x1xf32> -> vector<8x1xf32>
    %c264 = arith.constant 264 : index
    %c0_10 = arith.constant 0 : index
    %43 = vector.load %arg2[%c264, %c0_10] : memref<312x48xf32, #tpu.memory_space<vmem>>, vector<1x48xf32>
    %44 = vector.extract_strided_slice %43 {offsets = [0, 0], sizes = [1, 1], strides = [1, 1]} : vector<1x48xf32> to vector<1x1xf32>
    %45 = vector.broadcast %44 : vector<1x1xf32> to vector<8x1xf32>
    %46 = arith.addf %42, %45 : vector<8x1xf32>
    %c304 = arith.constant 304 : index
    %c0_11 = arith.constant 0 : index
    %47 = vector.load %arg2[%c304, %c0_11] : memref<312x48xf32, #tpu.memory_space<vmem>>, vector<1x48xf32>
    %48 = vector.extract_strided_slice %47 {offsets = [0, 0], sizes = [1, 30], strides = [1, 1]} : vector<1x48xf32> to vector<1x30xf32>
    %49 = vector.broadcast %46 : vector<8x1xf32> to vector<8x30xf32>
    %50 = vector.broadcast %48 : vector<1x30xf32> to vector<8x30xf32>
    %51 = arith.subf %49, %50 : vector<8x30xf32>
    %52 = arith.mulf %51, %51 : vector<8x30xf32>
    %53 = tpu.iota {dimensions = array<i32: 1>} : vector<8x30xi32>
    %cst_12 = arith.constant dense<0x7F800000> : vector<8xf32>
    %54 = vector.multi_reduction <minimumf>, %52, %cst_12 [1] : vector<8x30xf32> to vector<8xf32>
    %55 = vector.shape_cast %54 : vector<8xf32> to vector<8x1xf32>
    %56 = vector.broadcast %55 : vector<8x1xf32> to vector<8x30xf32>
    %57 = arith.cmpf oeq, %52, %56 : vector<8x30xf32>
    %c30_i32 = arith.constant 30 : i32
    %58 = vector.broadcast %c30_i32 : i32 to vector<8x30xi32>
    %59 = arith.select %57, %53, %58 : vector<8x30xi1>, vector<8x30xi32>
    %cst_13 = arith.constant dense<2147483647> : vector<8xi32>
    %60 = vector.multi_reduction <minsi>, %59, %cst_13 [1] : vector<8x30xi32> to vector<8xi32>
    %61 = vector.shape_cast %60 : vector<8xi32> to vector<8x1xi32>
    %62 = vector.broadcast %61 : vector<8x1xi32> to vector<8x30xi32>
    %63 = arith.cmpi eq, %53, %62 : vector<8x30xi32>
    %64 = arith.extui %63 : vector<8x30xi1> to vector<8x30xi32>
    %65 = arith.sitofp %64 : vector<8x30xi32> to vector<8x30xf32>
    %c272 = arith.constant 272 : index
    %c0_14 = arith.constant 0 : index
    %66 = vector.load %arg2[%c272, %c0_14] : memref<312x48xf32, #tpu.memory_space<vmem>>, vector<30x48xf32>
    %67 = vector.extract_strided_slice %66 {offsets = [0, 0], sizes = [30, 1], strides = [1, 1]} : vector<30x48xf32> to vector<30x1xf32>
    %cst_15 = arith.constant dense<0.000000e+00> : vector<8x1xf32>
    %68 = tpu.matmul %65, %67, %cst_15 {dimension_numbers = #tpu.dot_dimension_numbers<[1], [0], [0], [1], [0, 0, 1, 1], [], []>} : vector<8x30xf32>, vector<30x1xf32>, vector<8x1xf32> -> vector<8x1xf32>
    %c88 = arith.constant 88 : index
    %c0_16 = arith.constant 0 : index
    %69 = vector.load %arg2[%c88, %c0_16] : memref<312x48xf32, #tpu.memory_space<vmem>>, vector<1x48xf32>
    %c80 = arith.constant 80 : index
    %c0_17 = arith.constant 0 : index
    %70 = vector.load %arg2[%c80, %c0_17] : memref<312x48xf32, #tpu.memory_space<vmem>>, vector<7x48xf32>
    %71 = vector.broadcast %68 : vector<8x1xf32> to vector<8x48xf32>
    %72 = vector.broadcast %69 : vector<1x48xf32> to vector<8x48xf32>
    %73 = arith.mulf %71, %72 : vector<8x48xf32>
    %c0_18 = arith.constant 0 : index
    %c0_19 = arith.constant 0 : index
    %74 = vector.load %arg1[%c0_18, %c0_19] : memref<8x7xf32, #tpu.memory_space<vmem>>, vector<8x7xf32>
    %cst_20 = arith.constant dense<0.000000e+00> : vector<8x48xf32>
    %75 = tpu.matmul %74, %70, %cst_20 {dimension_numbers = #tpu.dot_dimension_numbers<[1], [0], [0], [1], [0, 0, 1, 1], [], []>} : vector<8x7xf32>, vector<7x48xf32>, vector<8x48xf32> -> vector<8x48xf32>
    %76 = arith.addf %73, %75 : vector<8x48xf32>
    %c96 = arith.constant 96 : index
    %c0_21 = arith.constant 0 : index
    %77 = vector.load %arg2[%c96, %c0_21] : memref<312x48xf32, #tpu.memory_space<vmem>>, vector<1x48xf32>
    %78 = vector.broadcast %77 : vector<1x48xf32> to vector<8x48xf32>
    %79 = arith.addf %76, %78 : vector<8x48xf32>
    %cst_22 = arith.constant 0.000000e+00 : f32
    %80 = vector.broadcast %cst_22 : f32 to vector<8x48xf32>
    %81 = arith.maximumf %79, %80 : vector<8x48xf32>
    %c104 = arith.constant 104 : index
    %c0_23 = arith.constant 0 : index
    %82 = vector.load %arg2[%c104, %c0_23] : memref<312x48xf32, #tpu.memory_space<vmem>>, vector<48x48xf32>
    %cst_24 = arith.constant dense<0.000000e+00> : vector<8x48xf32>
    %83 = tpu.matmul %81, %82, %cst_24 {dimension_numbers = #tpu.dot_dimension_numbers<[1], [0], [0], [1], [0, 0, 1, 1], [], []>} : vector<8x48xf32>, vector<48x48xf32>, vector<8x48xf32> -> vector<8x48xf32>
    %c152 = arith.constant 152 : index
    %c0_25 = arith.constant 0 : index
    %84 = vector.load %arg2[%c152, %c0_25] : memref<312x48xf32, #tpu.memory_space<vmem>>, vector<1x48xf32>
    %85 = vector.broadcast %84 : vector<1x48xf32> to vector<8x48xf32>
    %86 = arith.addf %83, %85 : vector<8x48xf32>
    %cst_26 = arith.constant 0.000000e+00 : f32
    %87 = vector.broadcast %cst_26 : f32 to vector<8x48xf32>
    %88 = arith.maximumf %86, %87 : vector<8x48xf32>
    %c160 = arith.constant 160 : index
    %c0_27 = arith.constant 0 : index
    %89 = vector.load %arg2[%c160, %c0_27] : memref<312x48xf32, #tpu.memory_space<vmem>>, vector<48x48xf32>
    %90 = vector.extract_strided_slice %89 {offsets = [0, 0], sizes = [48, 3], strides = [1, 1]} : vector<48x48xf32> to vector<48x3xf32>
    %cst_28 = arith.constant dense<0.000000e+00> : vector<8x3xf32>
    %91 = tpu.matmul %88, %90, %cst_28 {dimension_numbers = #tpu.dot_dimension_numbers<[1], [0], [0], [1], [0, 0, 1, 1], [], []>} : vector<8x48xf32>, vector<48x3xf32>, vector<8x3xf32> -> vector<8x3xf32>
    %c208 = arith.constant 208 : index
    %c0_29 = arith.constant 0 : index
    %92 = vector.load %arg2[%c208, %c0_29] : memref<312x48xf32, #tpu.memory_space<vmem>>, vector<1x48xf32>
    %93 = vector.extract_strided_slice %92 {offsets = [0, 0], sizes = [1, 3], strides = [1, 1]} : vector<1x48xf32> to vector<1x3xf32>
    %94 = vector.broadcast %93 : vector<1x3xf32> to vector<8x3xf32>
    %95 = arith.addf %91, %94 : vector<8x3xf32>
    %c0_30 = arith.constant 0 : index
    %c0_31 = arith.constant 0 : index
    %96 = vector.load %arg3[%c0_30, %c0_31] : memref<8x3xf32, #tpu.memory_space<vmem>>, vector<8x3xf32>
    tpu.vector_store %arg3[%c0_30, %c0_31], %95 {strides = array<i32>} : memref<8x3xf32, #tpu.memory_space<vmem>>, vector<8x3xf32>,
    return
  }
}

</mosaic_0001>

<bundles_post_ra>
// kernel: tpu_custom_call.1
= control target key start
LH: loop header
LB: loop body
LE: loop exit
PB: predicated region body
PF: predicated region fallthrough
CT: control target
= control target key end

     0   :  { %vm73_vm0 = vcmask 1040384   ;;  %vm30_vm1 = vcmask 72704   ;;  %vm1034_vm2 = vmmov 1   ;;  %v1035_v20 = vmov 0.0|0.0   ;;  %s1275_s2 = inlined_call_operand.vmem [shape: f32[312,48], index: 2, kind: input, shape index: {}]   ;;  %s1276_s0 = inlined_call_operand.vmem [shape: f32[112,9], index: 0, kind: input, shape index: {}]   ;;  %s1277_s1 = inlined_call_operand.vmem [shape: f32[8,7], index: 1, kind: input, shape index: {}]   ;;  %s1278_s3 = inlined_call_operand.vmem [shape: f32[8,3], index: 3, kind: output, shape index: {}]  }
   0x1   :  { %v14_v0 = vld [vmem:[%s1275_s2] sm:$0xff]  ;;  %v15_v1 = vld [vmem:[%s1275_s2 + $0x8] sm:$0x1]  ;;  %vm979_vm3 = vmpackc.low %vm73_vm0, %vm1034_vm2  ;;  %984 = vmatprep.subr.bf16.mxu1 %v1035_v20  ;;  %vm1036_vm4 = vmmov 0   ;;  %v1037_v27 = vmov 0.0   ;;  %vm242_vm5 = vcmask 392192  }
   0x2   :  { %v978_v2 = vpack.c.bf16 %v15_v1, %v14_v0  ;;  %v16_v3 = vld [vmem:[%s1276_s0] sm:$0xff]  ;;  %v17_v4 = vld [vmem:[%s1276_s0 + $0x8] sm:$0xff]  ;;  %v18_v5 = vld [vmem:[%s1276_s0 + $0x10] sm:$0xff]  ;;  %914 = vmatprep.mubr.msk.f32.mxu1 %vm1036_vm4, %v1037_v27  ;;  %vm415_vm6 = vcmask 244736   ;;  %vm446_vm8 = vcmask 1045504   ;;  %vm537_vm11 = vcmask 1046528  }
   0x3   :  { %881 = vmatprep.mubr.msk.f32.mxu0 %vm30_vm1, %v16_v3  ;;  %v19_v6 = vld [vmem:[%s1276_s0 + $0x18] sm:$0xff]  ;;  %v20_v7 = vld [vmem:[%s1276_s0 + $0x20] sm:$0xff]  ;;  %v21_v8 = vld [vmem:[%s1276_s0 + $0x28] sm:$0xff]  ;;  %vm533_vm12 = vcmask 56320   ;;  %vm788_vm14 = vcmask 23552  }
   0x4   :  { %980 = vmatprep.subr.msk.bf16.mxu0 %vm979_vm3, %v978_v2  ;;  %v22_v9 = vld [vmem:[%s1276_s0 + $0x30] sm:$0xff]  ;;  %v23_v10 = vld [vmem:[%s1276_s0 + $0x38] sm:$0xff]  ;;  %v24_v11 = vld [vmem:[%s1276_s0 + $0x40] sm:$0xff] }
   0x5   :  { %983 = vmatpush3.bf16.msk.msra.mxu0 %vm979_vm3, %v978_v2  ;;  %v25_v12 = vld [vmem:[%s1276_s0 + $0x48] sm:$0xff]  ;;  %v26_v13 = vld [vmem:[%s1276_s0 + $0x50] sm:$0xff]  ;;  %v27_v14 = vld [vmem:[%s1276_s0 + $0x58] sm:$0xff] }
   0x6   :  { %v28_v15 = vld [vmem:[%s1276_s0 + $0x60] sm:$0xff]  ;;  %v29_v16 = vld [vmem:[%s1276_s0 + $0x68] sm:$0xff]  ;;  %v231_v17 = vld [vmem:[%s1275_s2 + $0x18] sm:$0xff]  ;;  %1002 = vmatprep.subr.bf16.mxu0 %v1035_v20 }
   0x7   :  { %v232_v18 = vld [vmem:[%s1275_s2 + $0x20] sm:$0xff]  ;;  %v233_v21 = vld [vmem:[%s1275_s2 + $0x28] sm:$0xff]  ;;  %v234_v22 = vld [vmem:[%s1275_s2 + $0x30] sm:$0xff] }
   0x8   :  { %882 = vmatmul.mubr.msk.f32.vlgmr.msra.gmra.mrb[0].mxu0 %vm30_vm1, %v17_v4  ;;  %v985_v19 = vpack.c.bf16 %v232_v18, %v231_v17  ;;  %v988_v23 = vpack.c.bf16 %v234_v22, %v233_v21  ;;  %v235_v24 = vld [vmem:[%s1275_s2 + $0x38] sm:$0xff]  ;;  %v236_v25 = vld [vmem:[%s1275_s2 + $0x40] sm:$0xff]  ;;  %v809_v56 = vld [vmem:[%s1275_s2 + $0x10] ss:$0 sm:$0xff]  ;;  %v413_v17 = vlaneseq }
   0x9   :  { %884 = vmatprep.mubr.msk.f32.mxu0 %vm30_vm1, %v18_v5  ;;  %v991_v26 = vpack.c.bf16 %v236_v25, %v235_v24  ;;  %v317_v54 = vld [vmem:[%s1275_s2 + $0xd8] sm:$0xff]  ;;  %v318_v55 = vld [vmem:[%s1275_s2 + $0xe0] sm:$0xff]  ;;  %v319_v60 = vld [vmem:[%s1275_s2 + $0xe8] sm:$0xff] }
   0xa   :  { %986 = vmatpush3.bf16.msra.mxu1 %v985_v19  ;;  %v994_v58 = vpack.c.bf16 %v318_v55, %v317_v54  ;;  %v320_v61 = vld [vmem:[%s1275_s2 + $0xf0] sm:$0xff]  ;;  %v321_v63 = vld [vmem:[%s1275_s2 + $0xf8] sm:$0xff]  ;;  %v322_v0 = vld [vmem:[%s1275_s2 + $0x100] sm:$0xff]  ;;  %v414_v18 = vand.u32 127, %v413_v17 }
   0xb   :  { %987 = vmatprep.subr.bf16.mxu1 %v1035_v20  ;;  %v997_v62 = vpack.c.bf16 %v320_v61, %v319_v60  ;;  %v1000_v1 = vpack.c.bf16 %v322_v0, %v321_v63  ;;  %v810_v2 = vld [vmem:[%s1275_s2 + $0x48] ss:$0 sm:$0xff]  ;;  %v439_v25 = vld [vmem:[%s1275_s2 + $0x110] sm:$0xff]  ;;  %vm1007_vm9 = vmpackc.low %vm446_vm8, %vm1034_vm2 }
   0xc   :  { %885 = vmatmul.mubr.msk.f32.gmra.mrb[2].mxu0 %vm30_vm1, %v19_v6  ;;  %v624_v54 = vld [vmem:[%s1275_s2 + $0x90] sm:$0xff]  ;;  %v707_v60 = vld [vmem:[%s1275_s2 + $0xb8] sm:$0xff] }
   0xd   :  { %887 = vmatprep.mubr.msk.f32.mxu0 %vm30_vm1, %v20_v7  ;;  %v1038_v7 = vmov 0  }
   0xe   :  { %989 = vmatpush3.bf16.msra.mxu1 %v988_v23  ;;  %1032 = vset.pattern.permute.xlu0 %v1038_v7 }
   0xf   :  { %990 = vmatprep.subr.bf16.mxu1 %v1035_v20  ;;  %1033 = vset.pattern.permute.xlu1 %v1038_v7  ;;  %v822_v7 = vld [vmem:[%s1275_s2 + $0x98] ss:$0 sm:$0xff] }
  0x10   :  { %888 = vmatmul.mubr.msk.f32.gmra.mrb[4].mxu0 %vm30_vm1, %v21_v8  ;;  %v812_v8 = vld [vmem:[%s1275_s2 + $0x108] ss:$0 sm:$0xff] }
  0x11   :  { %890 = vmatprep.mubr.msk.f32.mxu0 %vm30_vm1, %v22_v9 }
  0x12   :  { %992 = vmatpush3.bf16.msra.mxu1 %v991_v26  ;;  %v440_v26 = vld [vmem:[%s1275_s2 + $0x118] sm:$0xff] }
  0x13   :  { %993 = vmatprep.subr.bf16.mxu1 %v1035_v20 }
  0x14   :  { %891 = vmatmul.mubr.msk.f32.gmra.mrb[6].mxu0 %vm30_vm1, %v23_v10 }
  0x15   :  { %893 = vmatprep.mubr.msk.f32.mxu0 %vm30_vm1, %v24_v11 }
  0x18   :  { %894 = vmatmul.mubr.msk.f32.gmra.mrb[8].mxu0 %vm30_vm1, %v25_v12  ;;  %v814_v12 = vld [vmem:[%s1275_s2 + $0x130] ss:$0 sm:$0xff] }
  0x19   :  { %896 = vmatprep.mubr.msk.f32.mxu0 %vm30_vm1, %v26_v13 }
  0x1c   :  { %897 = vmatmul.mubr.msk.f32.gmra.mrb[10].mxu0 %vm30_vm1, %v27_v14 }
  0x1d   :  { %899 = vmatprep.mubr.msk.f32.mxu0 %vm30_vm1, %v28_v15 }
  0x20   :  { %900 = vmatmul.mubr.msk.f32.gmra.mrb[12].mxu0 %vm30_vm1, %v29_v16 }
  0x21   :  { %940 = vmatprep.mubr.msk.f32.mxu0 %vm1036_vm4, %v1037_v27 }
  0xdb   :  { %v883_v28 = vpop.f32.mrb[0].mxu0 }
  0xdc   :  { %v143_v29 = vpop.f32.mrb[1].mxu0 }
  0xdd   :  { %v212_v30 = vmax.f32 %v143_v29, %v883_v28  ;;  %v441_v28 = vld [vmem:[%s1275_s2 + $0x120] sm:$0xff]  ;;  %v1003_v29 = vpack.c.bf16 %v440_v26, %v439_v25 }
  0xdf   :  { %v886_v31 = vpop.f32.mrb[2].mxu0  ;;  %1004 = vmatpush3.bf16.msra.mxu0 %v1003_v29 }
  0xe0   :  { %v153_v32 = vpop.f32.mrb[3].mxu0  ;;  %1005 = vmatprep.subr.bf16.mxu0 %v1035_v20 }
  0xe1   :  { %v213_v33 = vmax.f32 %v153_v32, %v886_v31 }
  0xe3   :  { %v219_v34 = vmax.f32 %v212_v30, %v213_v33  ;;  %v889_v35 = vpop.f32.mrb[4].mxu0  ;;  %v442_v30 = vld [vmem:[%s1275_s2 + $0x128] sm:$0x3f] }
  0xe4   :  { %v163_v36 = vpop.f32.mrb[5].mxu0  ;;  %v1006_v31 = vpack.c.bf16 %v442_v30, %v441_v28 }
  0xe5   :  { %v214_v37 = vmax.f32 %v163_v36, %v889_v35  ;;  %v521_v36 = vld [vmem:[%s1275_s2 + $0x50] sm:$0x7f] }
  0xe6   :  { %1008 = vmatpush3.bf16.msk.msra.mxu0 %vm1007_vm9, %v1006_v31 }
  0xe7   :  { %v892_v38 = vpop.f32.mrb[6].mxu0  ;;  %1018 = vmatprep.subr.bf16.mxu0 %v1035_v20 }
  0xe8   :  { %v173_v39 = vpop.f32.mrb[7].mxu0 }
  0xe9   :  { %v215_v40 = vmax.f32 %v173_v39, %v892_v38 }
  0xeb   :  { %v220_v41 = vmax.f32 %v214_v37, %v215_v40  ;;  %v895_v42 = vpop.f32.mrb[8].mxu0  ;;  %v532_v37 = vld [vmem:[%s1277_s1] sm:$0xff] }
  0xec   :  { %v183_v43 = vpop.f32.mrb[9].mxu0 }
  0xed   :  { %v222_v44 = vmax.f32 %v219_v34, %v220_v41  ;;  %v216_v45 = vmax.f32 %v183_v43, %v895_v42 }
  0xef   :  { %v898_v46 = vpop.f32.mrb[10].mxu0 }
  0xf0   :  { %v193_v47 = vpop.f32.mrb[11].mxu0 }
  0xf1   :  { %v217_v48 = vmax.f32 %v193_v47, %v898_v46  ;;  %v621_v47 = vld [vmem:[%s1275_s2 + $0x78] sm:$0xff] }
  0xf3   :  { %v221_v49 = vmax.f32 %v216_v45, %v217_v48  ;;  %v901_v50 = vpop.f32.mrb[12].mxu0  ;;  %v620_v45 = vld [vmem:[%s1275_s2 + $0x70] sm:$0xff] }
  0xf4   :  { %v203_v51 = vpop.f32.mrb[13].mxu0 }
  0xf5   :  { %v218_v52 = vmax.f32 %v203_v51, %v901_v50 }
  0xf7   :  { %v223_v53 = vmax.f32 %v221_v49, %v218_v52 }
  0xf9   :  { %v224_v57 = vmax.f32 %v222_v44, %v223_v53  ;;  %v619_v44 = vld [vmem:[%s1275_s2 + $0x68] sm:$0xff] }
  0xfa   :  { %v1010_v46 = vpack.c.bf16 %v620_v45, %v619_v44  ;;  %v623_v53 = vld [vmem:[%s1275_s2 + $0x88] sm:$0xff] }
  0xfb   :  { %v230_v59 = vadd.f32 %v809_v56, %v224_v57  ;;  %v1016_v55 = vpack.c.bf16 %v624_v54, %v623_v53  ;;  %v704_v56 = vld [vmem:[%s1275_s2 + $0xa0] sm:$0xff]  ;;  %v705_v57 = vld [vmem:[%s1275_s2 + $0xa8] sm:$0xff] }
  0xfd   :  { %915 = vmatmul.mubr.msk.f32.vlgmr.msra.gmra.mrb[0].mxu1 %vm242_vm5, %v230_v59  ;;  %v1019_v59 = vpack.c.bf16 %v705_v57, %v704_v56 }
  0xfe   :  { %995 = vmatpush3.bf16.msra.mxu1 %v994_v58  ;;  %929 = vmatprep.mubr.msk.f32.mxu1 %vm1036_vm4, %v1037_v27  ;;  %v706_v58 = vld [vmem:[%s1275_s2 + $0xb0] sm:$0xff] }
  0xff   :  { %996 = vmatprep.subr.bf16.mxu1 %v1035_v20  ;;  %v1022_v61 = vpack.c.bf16 %v707_v60, %v706_v58 }
 0x102   :  { %998 = vmatpush3.bf16.msra.mxu1 %v997_v62  ;;  %v818_v62 = vld [vmem:[%s1275_s2 + $0x58] ss:$0 sm:$0xff] }
 0x103   :  { %999 = vmatprep.subr.bf16.mxu1 %v1035_v20 }
 0x106   :  { %1001 = vmatpush3.bf16.msra.mxu1 %v1000_v1  ;;  %v821_v1 = vld [vmem:[%s1275_s2 + $0x60] ss:$0 sm:$0xff] }
 0x107   :  { %943 = vmatprep.subr.mxu1 %v1037_v27 }
 0x1d0   :  { %v312_v3 = vpop.f32.mrb[0].mxu1 }
 0x1d1   :  { %v313_v4 = vadd.f32 %v810_v2, %v312_v3  ;;  %v916_v5 = vpop.f32.mrb[1].mxu1 }
 0x1d2   :  { %v708_v5 = vld [vmem:[%s1275_s2 + $0xc0] sm:$0xff] }
 0x1d3   :  { %v316_v6 = vmax.f32 %v313_v4, 0.0 }
 0x1d5   :  { %930 = vmatmul.mubr.msk.f32.vlgmr.msra.gmra.mrb[2].mxu1 %vm242_vm5, %v316_v6 }
 0x1d6   :  { %945 = vmatprep.mubr.msk.f32.mxu1 %vm1036_vm4, %v1037_v27  ;;  %944 = vmatpush3.msk.msra.mxu1 %vm537_vm11, %v521_v36 }
 0x1d7   :  { %1009 = vmatprep.subr.bf16.mxu1 %v1035_v20 }
 0x1d9   :  { %946 = vmatmul.mubr.msk.f32.vlgmr.msra.gmra.mrb[4].mxu1 %vm533_vm12, %v532_v37 }
 0x1da   :  { %960 = vmatprep.mubr.msk.f32.mxu1 %vm1036_vm4, %v1037_v27  ;;  %1011 = vmatpush3.bf16.msra.mxu1 %v1010_v46 }
 0x1db   :  { %1012 = vmatprep.subr.bf16.mxu1 %v1035_v20 }
 0x2a8   :  { %v397_v9 = vpop.f32.mrb[2].mxu1 }
 0x2a9   :  { %v398_v10 = vadd.f32 %v812_v8, %v397_v9  ;;  %v931_v11 = vpop.f32.mrb[3].mxu1 }
 0x2ab   :  { %404 = vperm.xlu0 %1032, %v398_v10  }
 0x2ac   :  { %v607_v51 = vpop.f32.mrb[4].mxu1 }
 0x2ad   :  { %v947_v52 = vpop.f32.mrb[5].mxu1 }
 0x32a   :  { %v405_v13 = vpop.permute.xlu0 %404 }
 0x32b   :  { %v411_v14 = vsub.f32 %v405_v13, %v814_v12  ;;  %v824_v12 = vld [vmem:[%s1275_s2 + $0xd0] ss:$0 sm:$0xff] }
 0x32d   :  { %v412_v15 = vmul.f32 %v411_v14, %v411_v14 }
 0x32f   :  { %v416_v16 = vsel %vm415_vm6, %v412_v15, inf }
 0x330   :  { %417 = vmin.xlane.f32.xlu0 %v416_v16 }
 0x3bd   :  { %v418_v19 = vpop.xlane.xlu0 %417 }
 0x3be   :  { %vm419_vm7 = vcmp.eq.f32.partialorder %v412_v15, %v418_v19 }
 0x3bf   :  { %v420_v21 = vsel %vm419_vm7, %v414_v18, 30 }
 0x3c0   :  { %v421_v22 = vsel %vm415_vm6, %v420_v21, 2147483647 }
 0x3c1   :  { %v423_v23 = vshra.s32 %v421_v22, 16  ;;  %v422_v32 = vand.u32 65535, %v421_v22 }
 0x3c3   :  { %v425_v24 = vcvt.s32.f32 %v423_v23  ;;  %v424_v34 = vcvt.s32.f32 %v422_v32 }
 0x3c5   :  { %426 = vmin.xlane.f32.xlu1 %v425_v24 }
 0x452   :  { %v427_v33 = vpop.xlane.xlu1 %426 }
 0x453   :  { %vm428_vm10 = vcmp.eq.f32.partialorder %v425_v24, %v427_v33  ;;  %v433_v38 = vcvt.f32.s32 %v427_v33 }
 0x454   :  { %v429_v35 = vsel %vm428_vm10, %v424_v34, inf }
 0x455   :  { %430 = vmin.xlane.f32.xlu1 %v429_v35  ;;  %v434_v40 = vshll.u32 %v433_v38, 16 }
 0x4e2   :  { %v431_v39 = vpop.xlane.xlu1 %430 }
 0x4e3   :  { %v432_v41 = vcvt.f32.s32 %v431_v39 }
 0x4e5   :  { %v435_v42 = vadd.s32 %v434_v40, %v432_v41 }
 0x4e7   :  { %vm436_vm13 = vcmp.eq.s32.totalorder %v414_v18, %v435_v42 }
 0x4e8   :  { %v815_v43 = vsel %vm436_vm13, 1.0, %v1037_v27 }
 0x4e9   :  { %941 = vmatmul.mubr.msk.f32.vlgmr.msra.gmra.mrb[14].mxu0 %vm415_vm6, %v815_v43 }
 0x4ea   :  { %975 = vmatprep.mubr.msk.f32.mxu0 %vm1036_vm4, %v1037_v27  ;;  %v622_v27 = vld [vmem:[%s1275_s2 + $0x80] sm:$0xff]  ;;  %1020 = vmatpush3.bf16.msra.mxu0 %v1019_v59 }
 0x4eb   :  { %v1013_v49 = vpack.c.bf16 %v622_v27, %v621_v47  ;;  %1021 = vmatprep.subr.bf16.mxu0 %v1035_v20 }
 0x4ed   :  { %1014 = vmatpush3.bf16.msra.mxu1 %v1013_v49 }
 0x4ee   :  { %1015 = vmatprep.subr.bf16.mxu1 %v1035_v20  ;;  %1023 = vmatpush3.bf16.msra.mxu0 %v1022_v61 }
 0x4ef   :  { %1024 = vmatprep.subr.bf16.mxu0 %v1035_v20  ;;  %v709_v20 = vld [vmem:[%s1275_s2 + $0xc8] sm:$0xff] }
 0x4f0   :  { %v1025_v6 = vpack.c.bf16 %v709_v20, %v708_v5 }
 0x4f1   :  { %1017 = vmatpush3.bf16.msra.mxu1 %v1016_v55 }
 0x4f2   :  { %1026 = vmatpush3.bf16.msra.mxu0 %v1025_v6 }
 0x5bc   :  { %v516_v48 = vpop.f32.mrb[14].mxu0 }
 0x5bd   :  { %524 = vperm.xlu1 %1033, %v516_v48   ;;  %v942_v50 = vpop.f32.mrb[15].mxu0 }
 0x63c   :  { %v525_v63 = vpop.permute.xlu1 %524 }
 0x63d   :  { %v531_v0 = vmul.f32 %v818_v62, %v525_v63 }
 0x63f   :  { %v611_v2 = vadd.f32 %v607_v51, %v531_v0 }
 0x641   :  { %v617_v3 = vadd.f32 %v821_v1, %v611_v2 }
 0x643   :  { %v618_v4 = vmax.f32 %v617_v3, 0.0 }
 0x645   :  { %961 = vmatmul.mubr.msk.f32.vlgmr.msra.gmra.mrb[6].mxu1 %vm242_vm5, %v618_v4 }
 0x718   :  { %v699_v8 = vpop.f32.mrb[6].mxu1 }
 0x719   :  { %v700_v9 = vadd.f32 %v822_v7, %v699_v8  ;;  %v962_v10 = vpop.f32.mrb[7].mxu1 }
 0x71b   :  { %v703_v11 = vmax.f32 %v700_v9, 0.0 }
 0x71d   :  { %976 = vmatmul.mubr.msk.f32.vlgmr.msra.gmra.mrb[16].mxu0 %vm242_vm5, %v703_v11 }
 0x7f0   :  { %v784_v13 = vpop.f32.mrb[16].mxu0 }
 0x7f1   :  { %v785_v14 = vadd.f32 %v824_v12, %v784_v13  ;;  %v977_v15 = vpop.f32.mrb[17].mxu0 }
 0x7f3   :  { %789 = vst.msk [vmem:[%s1278_s3] sm:$0xff] %vm788_vm14, %v785_v14 }

</bundles_post_ra>
